<compile_context>
chip_gen: v6e
topology: v6e:2x2x1
jax: 0.10.0
libtpu: 0.0.40
codegen_flags: <defaults>
</compile_context>

<pallas_src>
import jax
import jax.numpy as jnp
from jax.experimental import pallas as pl
from jax.experimental.pallas import tpu as pltpu


def _logits_kernel(x_ref, w_ref, b_ref, out_ref):
    # x_ref:   [TM, D]      f32
    # w_ref:   [D,  C_pad]  f32 (resident across the batch grid)
    # b_ref:   [1,  C_pad]  f32 (resident)
    # out_ref: [TM, C_pad]  f32 (lane-dense store)
    logits = jnp.dot(x_ref[...], w_ref[...],
                     preferred_element_type=jnp.float32)
    out_ref[...] = (logits + b_ref[...]).astype(out_ref.dtype)


def _round_up(n, m):
    return ((n + m - 1) // m) * m


def logistic_model_forward(x, w2, b2, *, tm=256):
    """LogisticModel forward.

    x:  [B, D] f32 input features.
    w2: [D, C] f32 fc weight, stored transposed vs. nn.Linear ([in, out]).
    b2: [C]    f32 fc bias.

    Returns {'predictions': [B] int32, 'logistics': [B, C] f32}.
    """
    B, D = x.shape
    C = w2.shape[1]

    # Lane-dense padding of the class dimension (multiple of 128).
    C_pad = _round_up(max(C, 128), 128)
    w_p = jnp.zeros((D, C_pad), jnp.float32).at[:, :C].set(w2.astype(jnp.float32))
    b_p = jnp.zeros((1, C_pad), jnp.float32).at[0, :C].set(b2.astype(jnp.float32))

    # Batch tile: multiple of 8 sublanes, capped at tm; pad B up to a multiple.
    TM = min(tm, _round_up(B, 8))
    TM = _round_up(TM, 8)
    B_pad = _round_up(B, TM)
    x_p = x.astype(jnp.float32)
    if B_pad != B:
        x_p = jnp.zeros((B_pad, D), jnp.float32).at[:B, :].set(x_p)

    grid = (B_pad // TM,)

    logits_padded = pl.pallas_call(
        _logits_kernel,
        out_shape=jax.ShapeDtypeStruct((B_pad, C_pad), jnp.float32),
        grid_spec=pltpu.PrefetchScalarGridSpec(
            num_scalar_prefetch=0,
            grid=grid,
            in_specs=[
                pl.BlockSpec((TM, D), lambda i: (i, 0)),      # x tile
                pl.BlockSpec((D, C_pad), lambda i: (0, 0)),   # w (resident)
                pl.BlockSpec((1, C_pad), lambda i: (0, 0)),   # b (resident)
            ],
            out_specs=pl.BlockSpec((TM, C_pad), lambda i: (i, 0)),
        ),
        compiler_params=pltpu.CompilerParams(
            dimension_semantics=("parallel",)),
    )(x_p, w_p, b_p)

    logits = logits_padded[:B, :C]
    # argmax over C (tiny) is cheap in XLA and identical to argmax(softmax).
    preds = jnp.argmax(logits, axis=1).astype(jnp.int32)
    return {"predictions": preds, "logistics": logits}


def init_params(key, input_dim, classes_number):
    """Deterministic init mimicking nn.Linear default (uniform +/- 1/sqrt(fan_in))."""
    k1, k2 = jax.random.split(key, 2)
    bound = 1.0 / jnp.sqrt(jnp.float32(input_dim))
    w2 = jax.random.uniform(k1, (input_dim, classes_number), jnp.float32, -bound, bound)
    b2 = jax.random.uniform(k2, (classes_number,), jnp.float32, -bound, bound)
    return w2, b2


if __name__ == "__main__":
    B = 64           # batch
    D = 256          # input_dim (small, lane-aligned)
    C = 2            # classes_number

    key = jax.random.PRNGKey(0)
    kx, kp = jax.random.split(key)
    x = jax.random.normal(kx, (B, D), dtype=jnp.float32)
    w2, b2 = init_params(kp, D, C)

    # tm=32 so the demo exercises a multi-step batch grid (grid=(2,)).
    out = logistic_model_forward(x, w2, b2, tm=32)
    jax.block_until_ready(out)

    # Reference check in plain JAX.
    ref_logits = x @ w2 + b2
    ref_preds = jnp.argmax(ref_logits, axis=1)
    assert out["logistics"].shape == (B, C)
    assert out["predictions"].shape == (B,)
    assert jnp.allclose(out["logistics"], ref_logits, atol=1e-5, rtol=1e-5)
    assert jnp.all(out["predictions"] == ref_preds)

    print("KERNEL_OK")
</pallas_src>

<mosaic_0001>
module attributes {stable_mosaic.version = 11 : i64} {
  func.func @_logits_kernel(%arg0: i32, %arg1: memref<32x256xf32, #tpu.memory_space<vmem>>, %arg2: memref<256x128xf32, #tpu.memory_space<vmem>>, %arg3: memref<1x128xf32, #tpu.memory_space<vmem>>, %arg4: memref<32x128xf32, #tpu.memory_space<vmem>>) attributes {dimension_semantics = [#tpu.dimension_semantics<parallel>], iteration_bounds = array<i64: 2>, scalar_prefetch = 0 : i64, scratch_operands = 0 : i64, tpu.core_type = #tpu.core_type<tc>, window_params = [{transform_indices = @transform_0, window_bounds = array<i64: 32, 256>}, {pipeline_mode = #tpu.pipeline_mode<synchronous>, transform_indices = @transform_1, window_bounds = array<i64: 256, 128>}, {pipeline_mode = #tpu.pipeline_mode<synchronous>, transform_indices = @transform_2, window_bounds = array<i64: 1, 128>}, {transform_indices = @transform_3, window_bounds = array<i64: 32, 128>}]} {
    %c0 = arith.constant 0 : index
    %c0_0 = arith.constant 0 : index
    %0 = vector.load %arg1[%c0, %c0_0] : memref<32x256xf32, #tpu.memory_space<vmem>>, vector<32x256xf32>
    %c0_1 = arith.constant 0 : index
    %c0_2 = arith.constant 0 : index
    %1 = vector.load %arg2[%c0_1, %c0_2] : memref<256x128xf32, #tpu.memory_space<vmem>>, vector<256x128xf32>
    %cst = arith.constant dense<0.000000e+00> : vector<32x128xf32>
    %2 = tpu.matmul %0, %1, %cst {dimension_numbers = #tpu.dot_dimension_numbers<[1], [0], [0], [1], [0, 0, 1, 1], [], []>} : vector<32x256xf32>, vector<256x128xf32>, vector<32x128xf32> -> vector<32x128xf32>
    %c0_3 = arith.constant 0 : index
    %c0_4 = arith.constant 0 : index
    %3 = vector.load %arg3[%c0_3, %c0_4] : memref<1x128xf32, #tpu.memory_space<vmem>>, vector<1x128xf32>
    %4 = vector.broadcast %3 : vector<1x128xf32> to vector<32x128xf32>
    %5 = arith.addf %2, %4 : vector<32x128xf32>
    %c0_5 = arith.constant 0 : index
    %c0_6 = arith.constant 0 : index
    %6 = vector.load %arg4[%c0_5, %c0_6] : memref<32x128xf32, #tpu.memory_space<vmem>>, vector<32x128xf32>
    tpu.vector_store %arg4[%c0_5, %c0_6], %5 {strides = array<i32>} : memref<32x128xf32, #tpu.memory_space<vmem>>, vector<32x128xf32>,
    return
  }
  func.func @transform_0(%arg0: i32) -> (i32, i32) {
    %c0_i32 = arith.constant 0 : i32
    %c0_i32_0 = arith.constant 0 : i32
    return %arg0, %c0_i32 : i32, i32
  }
  func.func @transform_1(%arg0: i32) -> (i32, i32) {
    %c0_i32 = arith.constant 0 : i32
    %c0_i32_0 = arith.constant 0 : i32
    %c0_i32_1 = arith.constant 0 : i32
    return %c0_i32, %c0_i32_0 : i32, i32
  }
  func.func @transform_2(%arg0: i32) -> (i32, i32) {
    %c0_i32 = arith.constant 0 : i32
    %c0_i32_0 = arith.constant 0 : i32
    %c0_i32_1 = arith.constant 0 : i32
    return %c0_i32, %c0_i32_0 : i32, i32
  }
  func.func @transform_3(%arg0: i32) -> (i32, i32) {
    %c0_i32 = arith.constant 0 : i32
    %c0_i32_0 = arith.constant 0 : i32
    return %arg0, %c0_i32 : i32, i32
  }
}

</mosaic_0001>

<bundles_post_ra>
// kernel: tpu_custom_call.1
= control target key start
LH: loop header
LB: loop body
LE: loop exit
PB: predicated region body
PF: predicated region fallthrough
CT: control target
= control target key end

     0   :  { %8 = vsyncpa [#allocation3], 0  ;;  %s944_s0 = inlined_call_operand.hbm [shape: f32[64,256], index: 0, kind: input, shape index: {}]   ;;  %s945_s1 = inlined_call_operand.hbm [shape: f32[256,128], index: 1, kind: input, shape index: {}]   ;;  %s946_s2 = inlined_call_operand.vmem [shape: f32[1,128], index: 2, kind: input, shape index: {}]   ;;  %s947_s3 = inlined_call_operand.hbm [shape: f32[64,128], index: 3, kind: output, shape index: {}]  }
   0x1   :  { %10 = vsyncpa [#allocation3 + $0x1], 0 }
   0x2   :  { %11 = vsyncpa [#allocation6], 0 }
   0x3   :  { %12 = vsyncpa [#allocation4], 0 }
   0x4   :  { %14 = vsyncpa [#allocation4 + $0x1], 0  ;;  %s753_s12 = smov 0   ;;  %s755_s13 = smov 0  }
   0x5   :  { %s757_s14 = smov 0   ;;  %s759_s15 = smov 0  }
   0x6 LB: > { %s774_s16 = sadd.s32 4294967295, %s722_s15   ;;  %s440_s17 = sadd.s32 4294967294, %s722_s15   ;;  %s722_s15 = sphi %s759_s15, %s969_s15   ;;  %s718_s14 = sphi %s757_s14, %s968_s14   ;;  %s714_s13 = sphi %s755_s13, %s967_s13   ;;  %s710_s12 = sphi %s753_s12, %s966_s12  }
   0x7   : > { %p40_p0 = scmp.ne.s32.totalorder %s714_s13, %s710_s12  ;;  %p948_p1 = scmp.eq.s32.totalorder %s774_s16, 0 }
   0x8   : > { %p112_p3 = scmp.eq.s32.totalorder %s440_s17, 1  ;;  %p441_p5 = scmp.ge.s32.totalorder %s722_s15, 1 }
   0x9   : > { %p783_p4 = por %p948_p1, %p40_p0  ;;  %p119_p7 = scmp.lt.s32.totalorder %s722_s15, 3 }
   0xa   : > { %p788_p6 = por %p112_p3, %p40_p0  ;;  %s724_s21 = smov [#allocation5]  }
   0xb   : > { %s952_s18 = scalar_select %p783_p4, 1, 0 }
   0xc   : > { %s953_s19 = scalar_select %p788_p6, 1, 0 }
   0xd   : > { %p793_p8 = pnand %p441_p5, %p119_p7  ;;  %s131_s22 = sshll.u32 %s724_s21, 4  ;;  %s132_s22 = int_to_ptr.vmem [resolvable:$true] %s131_s22 }
   0xe   : > { %s807_s24 = sadd.s32 1, %s722_s15   ;;  %s27_s25 = sadd.s32 1, %s718_s14 }
   0xf   : > { %s954_s20 = scalar_select %p793_p8, 1, 0 }
  0x10   : > { %p545_p9 = pneg %p793_p8  ;;  %s24_s26 = ssub.s32 %s722_s15, %s807_s24 }
  0x11   : > { %s611_s27 = scalar_lea.vmem %s132_s22, 4096  ;;  %p619_p5 = scmp.lt.s32.totalorder %s132_s22, %s132_s22 }
  0x12   : > { %p802_p11 = pnand %p545_p9, %p948_p1  ;;  %p612_p13 = scmp.ne.s32.totalorder %s132_s22, %s611_s27 }
  0x13   : > { %p620_p7 = scmp.lt.s32.totalorder %s611_s27, %s611_s27 }
  0x14   : > { %p602_p12 = pneg %p802_p11 }
  0x15   : > { %p621_p10 = por %p620_p7, %p619_p5 }
  0x16   : > { %p614_p0 = pnand %p612_p13, %p602_p12 }
  0x18   : > { %p615_p3 = pneg %p614_p0 }
  0x1a   : > { %p622_p2 = pnand %p621_p10, %p615_p3 }
  0x1c   : > { %625 = shalt.err (!%p622_p2)
}
  0x1d   : > { %s725_s28 = smov 128   ;;  %s726_s29 = smov 8  }
  0x1e   : > { %548 = dma.hbm_to_vmem [thread:$0]  (!%p802_p11), %s945_s1, 4096, %s132_s22, [#allocation6], %s725_s28, %s725_s28, %s726_s29  }
  0x1f   : > { %p25_p9 = scmp.eq.s32.totalorder %s24_s26, 0  ;;  %p34_p12 = scmp.ne.s32.totalorder %s718_s14, %s714_s13 }
  0x20   : > { %p35_p10 = scmp.eq.s32.totalorder %s722_s15, 0  ;;  %p558_p2 = scmp.lt.s32.totalorder %s722_s15, 2 }
  0x21   : > { %s824_s5 = scalar_select %p25_p9, %s718_s14, %s27_s25  }
  0x22   : > { %p36_p13 = por %p35_p10, %p34_p12  ;;  %p956_p0 = scmp.eq.s32.totalorder %s774_s16, 1 }
  0x23   : > { %s148_s7 = sand.u32 1, %s718_s14   ;;  %s459_s8 = sshll.u32 %s722_s15, 10 }
  0x24   : > { %p828_p3 = por %p956_p0, %p34_p12  ;;  %s444_s9 = sshll.u32 %s148_s7, 6 }
  0x25   : > { %s837_s17 = scalar_lea.hbm %s944_s0, %s459_s8  ;;  %s152_s21 = scalar_lea.vmem [#allocation2], %s444_s9 }
  0x26   : > { %s957_s6 = scalar_select %p828_p3, 1, 0 }
  0x27   : > { %s160_s22 = sshll.u32 %s152_s21, 4  ;;  %p839_p11 = pnand %p558_p2, %p36_p13  ;;  %s843_s22 = int_to_ptr.vmem [resolvable:$true] %s160_s22 }
  0x28   : > { %s845_s25 = scalar_lea.sflag [#allocation3], %s148_s7  ;;  %s626_s26 = scalar_lea.hbm %s837_s17, 1024 }
  0x29   : > { %p627_p5 = scmp.ne.s32.totalorder %s837_s17, %s626_s26  ;;  %p628_p7 = pneg %p839_p11 }
  0x2a   : > { %s631_s29 = scalar_lea.hbm %s944_s0, 2048  ;;  %p632_p10 = scmp.lt.s32.totalorder %s837_s17, %s944_s0 }
  0x2b   : > { %p629_p9 = pnand %p628_p7, %p627_p5  ;;  %p633_p2 = scmp.lt.s32.totalorder %s631_s29, %s626_s26 }
  0x2d   : > { %p630_p12 = pneg %p629_p9  ;;  %p634_p13 = por %p633_p2, %p632_p10 }
  0x2f   : > { %p635_p0 = pnand %p634_p13, %p630_p12 }
  0x31   : > { %638 = shalt.err (!%p635_p0)
}
  0x32   : > { %s639_s7 = scalar_lea.vmem %s843_s22, 1024  ;;  %s727_s8 = smov [#allocation2]  }
  0x33   : > { %p640_p1 = scmp.ne.s32.totalorder %s843_s22, %s639_s7  ;;  %s644_s9 = sshll.u32 %s727_s8, 4  ;;  %s645_s9 = int_to_ptr.vmem [resolvable:$false] %s644_s9 }
  0x34   : > { %s646_s10 = scalar_lea.vmem %s645_s9, 2048  ;;  %p647_p9 = scmp.lt.s32.totalorder %s843_s22, %s645_s9 }
  0x35   : > { %p642_p6 = pnand %p640_p1, %p628_p7  ;;  %p648_p3 = scmp.lt.s32.totalorder %s646_s10, %s639_s7 }
  0x37   : > { %p643_p5 = pneg %p642_p6  ;;  %p649_p4 = por %p648_p3, %p647_p9 }
  0x39   : > { %p650_p8 = pnand %p649_p4, %p643_p5 }
  0x3b   : > { %653 = shalt.err (!%p650_p8)
}
  0x3c   : > { %s728_s11 = smov 256   ;;  %s729_s21 = smov 16  }
  0x3d   : > { %552 = dma.hbm_to_vmem [thread:$0]  (!%p839_p11), %s837_s17, 1024, %s843_s22, %s845_s25, %s728_s11, %s728_s11, %s729_s21  }
  0x3e   : > { %p959_p1 = scmp.ne.s32.totalorder %s954_s20, 0 }
  0x3f   : > { %s869_s26 = sand.u32 (!%p959_p1), 1, %s714_s13   ;;  %p960_p4 = scmp.ne.s32.totalorder (!%p959_p1), %s952_s18, 0 }
  0x40   : > { %172 = sbr.rel (%p959_p1) target bundleno = 324 (0x144), region = 32  ;;  %s449_s27 = sshll.u32 (!%p959_p1), %s869_s26, 6 }
  0x41   : > { %s175_s28 = scalar_lea.sflag (!%p959_p1), [#allocation3], %s869_s26  ;;  %s873_s29 = scalar_lea.vmem (!%p959_p1), [#allocation2], %s449_s27 }
  0x45   : > { %697 = dma.done.wait (%p960_p4), %s175_s28, 1024  }
  0x46   : > { %699 = vsyncadd (%p960_p4), %s175_s28, 4294966272  ;;  %p961_p6 = scmp.eq.s32.totalorder %s774_s16, 0 }
  0x48   : > { %701 = dma.done.wait (%p961_p6), [#allocation6], 4096   ;;  %p962_p8 = pmov %p961_p6 }
  0x49   : > { %v246_v0 = vld [vmem:[#allocation5 + $0xf8] sm:$0xff]  ;;  %v245_v2 = vld [vmem:[#allocation5 + $0xf0] sm:$0xff]  ;;  %v244_v4 = vld [vmem:[#allocation5 + $0xe8] sm:$0xff]  ;;  %s451_s18 = sshll.u32 %s869_s26, 5  ;;  %s460_s25 = sshll.u32 %s774_s16, 9 }
  0x4a   : > { %703 = vsyncadd (%p962_p8), [#allocation6], 4294963200  ;;  %v230_v1 = vld [vmem:[#allocation5 + $0x78] sm:$0xff]  ;;  %461 = vmatprep.subr.mxu0 %v246_v0  ;;  %505 = vmatprep.subr.mxu1 %v246_v0  ;;  %v229_v3 = vld [vmem:[#allocation5 + $0x70] sm:$0xff]  ;;  %s204_s22 = scalar_lea.vmem [#allocation7], %s451_s18  ;;  %s901_s7 = scalar_lea.hbm %s947_s3, %s460_s25 }
  0x4b   : > { %462 = vmatpush3.msra.mxu0 %v230_v1  ;;  %521 = vmatpush3.msra.mxu1 %v230_v1  ;;  %v228_v5 = vld [vmem:[#allocation5 + $0x68] sm:$0xff]  ;;  %v243_v6 = vld [vmem:[#allocation5 + $0xe0] sm:$0xff]  ;;  %v242_v8 = vld [vmem:[#allocation5 + $0xd8] sm:$0xff]  ;;  %s357_s23 = sshll.u32 %s204_s22, 4  ;;  %s344_s16 = scalar_lea.sflag [#allocation4], %s869_s26  ;;  %s896_s23 = int_to_ptr.vmem [resolvable:$true] %s357_s23 }
  0x4c   : > { %463 = vmatprep.subr.mxu0 %v245_v2  ;;  %506 = vmatprep.subr.mxu1 %v245_v2  ;;  %v227_v7 = vld [vmem:[#allocation5 + $0x60] sm:$0xff]  ;;  %v226_v9 = vld [vmem:[#allocation5 + $0x58] sm:$0xff]  ;;  %v241_v10 = vld [vmem:[#allocation5 + $0xd0] sm:$0xff]  ;;  %s654_s8 = scalar_lea.vmem %s896_s23, 512  ;;  %p963_p11 = scmp.ne.s32.totalorder %s957_s6, 0 }
  0x4d   : > { %464 = vmatpush3.msra.mxu0 %v229_v3  ;;  %522 = vmatpush3.msra.mxu1 %v229_v3  ;;  %v225_v11 = vld [vmem:[#allocation5 + $0x50] sm:$0xff]  ;;  %v240_v12 = vld [vmem:[#allocation5 + $0xc8] sm:$0xff]  ;;  %v239_v14 = vld [vmem:[#allocation5 + $0xc0] sm:$0xff]  ;;  %p655_p3 = scmp.ne.s32.totalorder %s896_s23, %s654_s8  ;;  %s730_s9 = smov [#allocation7]  }
  0x4e   : > { %465 = vmatprep.subr.mxu0 %v244_v4  ;;  %507 = vmatprep.subr.mxu1 %v244_v4  ;;  %v224_v13 = vld [vmem:[#allocation5 + $0x48] sm:$0xff]  ;;  %v223_v15 = vld [vmem:[#allocation5 + $0x40] sm:$0xff]  ;;  %v238_v16 = vld [vmem:[#allocation5 + $0xb8] sm:$0xff]  ;;  %s658_s10 = sshll.u32 %s730_s9, 4  ;;  %s659_s10 = int_to_ptr.vmem [resolvable:$false] %s658_s10 }
  0x4f   : > { %466 = vmatpush3.msra.mxu0 %v228_v5  ;;  %523 = vmatpush3.msra.mxu1 %v228_v5  ;;  %v222_v17 = vld [vmem:[#allocation5 + $0x38] sm:$0xff]  ;;  %v237_v18 = vld [vmem:[#allocation5 + $0xb0] sm:$0xff]  ;;  %v236_v20 = vld [vmem:[#allocation5 + $0xa8] sm:$0xff]  ;;  %p656_p7 = pnand %p655_p3, %p963_p11  ;;  %s660_s11 = scalar_lea.vmem %s659_s10, 1024 }
  0x50   : > { %467 = vmatprep.subr.mxu0 %v243_v6  ;;  %508 = vmatprep.subr.mxu1 %v243_v6  ;;  %v221_v19 = vld [vmem:[#allocation5 + $0x30] sm:$0xff]  ;;  %v220_v21 = vld [vmem:[#allocation5 + $0x28] sm:$0xff]  ;;  %v235_v22 = vld [vmem:[#allocation5 + $0xa0] sm:$0xff]  ;;  %p661_p10 = scmp.lt.s32.totalorder %s896_s23, %s659_s10  ;;  %p662_p2 = scmp.lt.s32.totalorder %s660_s11, %s654_s8 }
  0x51   : > { %468 = vmatpush3.msra.mxu0 %v227_v7  ;;  %524 = vmatpush3.msra.mxu1 %v227_v7  ;;  %v219_v23 = vld [vmem:[#allocation5 + $0x20] sm:$0xff]  ;;  %v234_v24 = vld [vmem:[#allocation5 + $0x98] sm:$0xff]  ;;  %v233_v26 = vld [vmem:[#allocation5 + $0x90] sm:$0xff]  ;;  %p657_p12 = pneg %p656_p7 }
  0x52   : > { %469 = vmatprep.subr.mxu0 %v242_v8  ;;  %509 = vmatprep.subr.mxu1 %v242_v8  ;;  %v218_v25 = vld [vmem:[#allocation5 + $0x18] sm:$0xff]  ;;  %v217_v27 = vld [vmem:[#allocation5 + $0x10] sm:$0xff]  ;;  %v232_v28 = vld [vmem:[#allocation5 + $0x88] sm:$0xff]  ;;  %p663_p13 = por %p662_p2, %p661_p10 }
  0x53   : > { %470 = vmatpush3.msra.mxu0 %v226_v9  ;;  %525 = vmatpush3.msra.mxu1 %v226_v9  ;;  %v216_v29 = vld [vmem:[#allocation5 + $0x8] sm:$0xff]  ;;  %v231_v30 = vld [vmem:[#allocation5 + $0x80] sm:$0xff]  ;;  %v210_v36 = vld [vmem:[%s873_s29 + $0x18] sm:$0xff] }
  0x54   : > { %471 = vmatprep.subr.mxu0 %v241_v10  ;;  %510 = vmatprep.subr.mxu1 %v241_v10  ;;  %v215_v31 = vld [vmem:[#allocation5] sm:$0xff]  ;;  %v208_v32 = vld [vmem:[%s873_s29 + $0x8] sm:$0xff]  ;;  %v214_v37 = vld [vmem:[%s873_s29 + $0x38] sm:$0xff]  ;;  %p664_p0 = pnand %p663_p13, %p657_p12 }
  0x55   : > { %472 = vmatpush3.msra.mxu0 %v225_v11  ;;  %526 = vmatpush3.msra.mxu1 %v225_v11  ;;  %v212_v33 = vld [vmem:[%s873_s29 + $0x28] sm:$0xff]  ;;  %v207_v34 = vld [vmem:[%s873_s29] sm:$0xff]  ;;  %v209_v38 = vld [vmem:[%s873_s29 + $0x10] sm:$0xff] }
  0x56   : > { %473 = vmatprep.subr.mxu0 %v240_v12  ;;  %511 = vmatprep.subr.mxu1 %v240_v12  ;;  %v211_v35 = vld [vmem:[%s873_s29 + $0x20] sm:$0xff]  ;;  %v213_v39 = vld [vmem:[%s873_s29 + $0x30] sm:$0xff] }
  0x57   : > { %474 = vmatpush3.msra.mxu0 %v224_v13  ;;  %527 = vmatpush3.msra.mxu1 %v224_v13  ;;  %v452_v42 = vld [vmem:[%s946_s2] ss:$0 sm:$0xff] }
  0x58   : > { %475 = vmatprep.subr.mxu0 %v239_v14  ;;  %512 = vmatprep.subr.mxu1 %v239_v14 }
  0x59   : > { %476 = vmatpush3.msra.mxu0 %v223_v15  ;;  %528 = vmatpush3.msra.mxu1 %v223_v15 }
  0x5a   : > { %477 = vmatprep.subr.mxu0 %v238_v16  ;;  %513 = vmatprep.subr.mxu1 %v238_v16 }
  0x5b   : > { %478 = vmatpush3.msra.mxu0 %v222_v17  ;;  %529 = vmatpush3.msra.mxu1 %v222_v17 }
  0x5c   : > { %479 = vmatprep.subr.mxu0 %v237_v18  ;;  %514 = vmatprep.subr.mxu1 %v237_v18 }
  0x5d   : > { %480 = vmatpush3.msra.mxu0 %v221_v19  ;;  %530 = vmatpush3.msra.mxu1 %v221_v19 }
  0x5e   : > { %481 = vmatprep.subr.mxu0 %v236_v20  ;;  %515 = vmatprep.subr.mxu1 %v236_v20 }
  0x5f   : > { %482 = vmatpush3.msra.mxu0 %v220_v21  ;;  %531 = vmatpush3.msra.mxu1 %v220_v21 }
  0x60   : > { %483 = vmatprep.subr.mxu0 %v235_v22  ;;  %516 = vmatprep.subr.mxu1 %v235_v22 }
  0x61   : > { %484 = vmatpush3.msra.mxu0 %v219_v23  ;;  %532 = vmatpush3.msra.mxu1 %v219_v23 }
  0x62   : > { %485 = vmatprep.subr.mxu0 %v234_v24  ;;  %517 = vmatprep.subr.mxu1 %v234_v24 }
  0x63   : > { %486 = vmatpush3.msra.mxu0 %v218_v25  ;;  %533 = vmatpush3.msra.mxu1 %v218_v25 }
  0x64   : > { %487 = vmatprep.subr.mxu0 %v233_v26  ;;  %518 = vmatprep.subr.mxu1 %v233_v26 }
  0x65   : > { %488 = vmatpush3.msra.mxu0 %v217_v27  ;;  %534 = vmatpush3.msra.mxu1 %v217_v27 }
  0x66   : > { %489 = vmatprep.subr.mxu0 %v232_v28  ;;  %519 = vmatprep.subr.mxu1 %v232_v28 }
  0x67   : > { %490 = vmatpush3.msra.mxu0 %v216_v29  ;;  %535 = vmatpush3.msra.mxu1 %v216_v29 }
  0x68   : > { %491 = vmatprep.subr.mxu0 %v231_v30  ;;  %520 = vmatprep.subr.mxu1 %v231_v30 }
  0x69   : > { %492 = vmatpush3.msra.mxu0 %v215_v31  ;;  %536 = vmatpush3.msra.mxu1 %v215_v31 }
  0x6a   : > { %318 = vmatprep.mubr.f32.mxu0 %v208_v32  ;;  %328 = vmatprep.mubr.f32.mxu1 %v212_v33 }
  0x6b   : > { %319 = vmatmul.mubr.f32.vlgmr.msra.gmra.mxu0 %v207_v34  ;;  %329 = vmatmul.mubr.f32.vlgmr.msra.gmra.mxu1 %v211_v35 }
  0x6c   : > { %323 = vmatprep.mubr.f32.mxu0 %v210_v36  ;;  %333 = vmatprep.mubr.f32.mxu1 %v214_v37 }
  0x6f   : > { %324 = vmatmul.mubr.f32.gmra.mxu0 %v209_v38  ;;  %334 = vmatmul.mubr.f32.gmra.mxu1 %v213_v39 }
 0x12b   : > { %v493_v40 = vpop.f32.mrf.mxu0  ;;  %v499_v41 = vpop.f32.mrf.mxu1 }
 0x12d   : > { %v494_v43 = vpop.f32.mrf.mxu0  ;;  %v500_v44 = vpop.f32.mrf.mxu1 }
 0x12e   : > { %v495_v45 = vadd.f32 %v494_v43, %v493_v40  ;;  %v501_v46 = vadd.f32 %v500_v44, %v499_v41 }
 0x12f   : > { %v496_v47 = vpop.f32.mrf.mxu0  ;;  %v502_v48 = vpop.f32.mrf.mxu1 }
 0x130   : > { %v321_v49 = vadd.f32 %v495_v45, %v452_v42  ;;  %v331_v50 = vadd.f32 %v501_v46, %v452_v42 }
 0x131   : > { %v497_v51 = vpop.f32.mrf.mxu0  ;;  %v503_v52 = vpop.f32.mrf.mxu1 }
 0x132   : > { %339 = vst [vmem:[%s204_s22] sm:$0xff] %v321_v49  ;;  %341 = vst [vmem:[%s204_s22 + $0x10] sm:$0xff] %v331_v50  ;;  %v498_v53 = vadd.f32 %v497_v51, %v496_v47  ;;  %v504_v54 = vadd.f32 %v503_v52, %v502_v48 }
 0x134   : > { %v326_v55 = vadd.f32 %v498_v53, %v452_v42  ;;  %v336_v56 = vadd.f32 %v504_v54, %v452_v42 }
 0x136   : > { %340 = vst [vmem:[%s204_s22 + $0x8] sm:$0xff] %v326_v55  ;;  %342 = vst [vmem:[%s204_s22 + $0x18] sm:$0xff] %v336_v56 }
 0x137   : > { %667 = shalt.err (!%p664_p0)
}
 0x138   : > { %s668_s21 = scalar_lea.hbm %s901_s7, 512  ;;  %s672_s29 = scalar_lea.hbm %s947_s3, 1024 }
 0x139   : > { %p669_p5 = scmp.ne.s32.totalorder %s901_s7, %s668_s21  ;;  %p673_p4 = scmp.lt.s32.totalorder %s901_s7, %s947_s3 }
 0x13a   : > { %p674_p6 = scmp.lt.s32.totalorder %s672_s29, %s668_s21 }
 0x13b   : > { %p670_p9 = pnand %p669_p5, %p963_p11 }
 0x13c   : > { %p675_p8 = por %p674_p6, %p673_p4 }
 0x13d   : > { %p671_p1 = pneg %p670_p9 }
 0x13f   : > { %p676_p3 = pnand %p675_p8, %p671_p1 }
 0x141   : > { %679 = shalt.err (!%p676_p3)
}
 0x142   : > { %s731_s17 = smov 128   ;;  %s732_s22 = smov 8  }
 0x143   : > { %543 = dma.vmem_to_hbm [thread:$0]  (%p963_p11), %s896_s23, 512, %s901_s7, %s344_s16, %s731_s17, %s731_s17, %s732_s22  }
 0x144 PF: > { %s372_s25 = sand.u32 1, %s710_s12   ;;  %p964_p7 = scmp.ne.s32.totalorder %s953_s19, 0 }
 0x145   : > { %p965_p12 = scmp.ge.s32.totalorder %s722_s15, 2  ;;  %s373_s30 = scalar_lea.sflag [#allocation4], %s372_s25 }
 0x147   : > { %p554_p10 = pnand %p965_p12, %p964_p7 }
 0x149   : > { %p555_p2 = pneg %p554_p10 }
 0x14b   : > { %705 = dma.done.wait (%p555_p2), %s373_s30, 512  }
 0x14c   : > { %707 = vsyncadd (%p555_p2), %s373_s30, 4294966784  ;;  %p17_p13 = scmp.ge.s32.totalorder %s807_s24, 4   ;;  %s966_s12 = smov %s714_s13 }
 0x14d   : > { %s967_s13 = smov %s718_s14  ;;  %s968_s14 = smov %s824_s5 }
 0x14e   : > { %s969_s15 = smov %s807_s24  ;;  %19 = sbr.rel (!%p17_p13) target bundleno = 6 (0x6), region = 81 }
 0x153   :  { %378 = vsyncpa [#allocation3], 1 }
 0x154   :  { %380 = vsyncpa [#allocation3 + $0x1], 1 }
 0x155   :  { %381 = vsyncpa [#allocation6], 1 }
 0x156   :  { %382 = vsyncpa [#allocation4], 1 }
 0x157   :  { %384 = vsyncpa [#allocation4 + $0x1], 1 }

</bundles_post_ra>
